<compile_context>
chip_gen: v5e
topology: v5e:2x2
jax: 0.10.0
libtpu: 0.0.40
codegen_flags: <defaults>
</compile_context>

<pallas_src>
import functools

import jax
import jax.numpy as jnp
from jax.experimental import pallas as pl
from jax.experimental.pallas import tpu as pltpu


def _round_up(n, m):
    return ((n + m - 1) // m) * m


# ------------------------- Pallas kernel -------------------------

def _conv_bn_relu_kernel(x_ref, w_ref, b_ref, o_ref, *, K, Wp, Lout):
    # x_ref : (Cin, Lin)        bf16, zero-padded input, (b, h_pad, w_pad)
    #                           flattened onto the lane axis (Lin mult of 128)
    # w_ref : (K*K, Cout, Cin)  bf16 conv weight with BN scale folded in
    # b_ref : (Cout, 1)         f32 folded BN bias (+ conv bias)
    # o_ref : (Cout, Lout)      f32 dense (stride-1) conv output on the padded
    #                           grid, lane-dense (Lout mult of 128)
    x = x_ref[...]                                    # one VMEM load
    cout = o_ref.shape[0]
    acc = jnp.zeros((cout, Lout), jnp.float32)
    # Build the im2col contraction in VMEM: K*K static lane-shifted views of
    # the flattened padded image, each contracted over Cin on the MXU.
    for kh in range(K):
        for kw in range(K):
            d = kh * Wp + kw                          # static lane offset
            piece = x[:, d:d + Lout]                  # (Cin, Lout) slice
            acc = acc + jnp.dot(w_ref[kh * K + kw], piece,
                                preferred_element_type=jnp.float32)
    # Fused BatchNorm (scale pre-folded into weights) + ReLU epilogue, f32.
    o_ref[...] = jnp.maximum(acc + b_ref[...], 0.0)


# ------------------------- forward pass -------------------------

def basic_conv2d_forward(params, x, *, stride, padding, eps=1e-5):
    """BasicConv2d forward.  x is NCHW float32; BatchNorm is eval-mode (folded)."""
    w = params["conv_w"]                              # (Cout, Cin, K, K)
    Cout, Cin, K, _ = w.shape
    B, Cin_x, H, W = x.shape
    assert Cin_x == Cin
    s, p = stride, padding
    Hout = (H + 2 * p - K) // s + 1
    Wout = (W + 2 * p - K) // s + 1
    Hp, Wp = H + 2 * p, W + 2 * p

    # ---- fold eval-mode BN into the conv weight / a per-channel bias (one-time)
    inv = params["bn_gamma"] / jnp.sqrt(params["bn_var"] + eps)
    w_folded = (w * inv[:, None, None, None]).astype(jnp.float32)
    bias = (params["bn_beta"] + inv * (params["conv_b"] - params["bn_mean"]))
    bias = bias.reshape(Cout, 1).astype(jnp.float32)
    # weight as (K*K, Cout, Cin), bf16 for the MXU
    w_k = jnp.transpose(w_folded, (2, 3, 0, 1)).reshape(K * K, Cout, Cin)
    w_k = w_k.astype(jnp.bfloat16)

    # ---- lane-dense flattened input (Cin, Lin): (b, h_pad, w_pad) on lanes
    q_need_max = (B - 1) * Hp * Wp + (Hout - 1) * s * Wp + (Wout - 1) * s
    Lout = _round_up(q_need_max + 1, 128)             # lane-dense output width
    d_max = (K - 1) * Wp + (K - 1)                    # largest in-kernel shift
    Lin = _round_up(max(B * Hp * Wp, Lout + d_max), 128)

    xp = jnp.pad(x, ((0, 0), (0, 0), (p, p), (p, p)))            # (B,Cin,Hp,Wp)
    x_flat = jnp.transpose(xp, (1, 0, 2, 3)).reshape(Cin, B * Hp * Wp)
    x_flat = jnp.pad(x_flat, ((0, 0), (0, Lin - B * Hp * Wp)))
    x_flat = x_flat.astype(jnp.bfloat16)

    kernel = functools.partial(_conv_bn_relu_kernel, K=K, Wp=Wp, Lout=Lout)
    out = pl.pallas_call(
        kernel,
        out_shape=jax.ShapeDtypeStruct((Cout, Lout), jnp.float32),
        in_specs=[pl.BlockSpec(memory_space=pltpu.MemorySpace.VMEM)] * 3,
        out_specs=pl.BlockSpec(memory_space=pltpu.MemorySpace.VMEM),
        compiler_params=pltpu.CompilerParams(
            # let the pad/transpose/bf16-cast glue fuse into the input DMA
            allow_input_fusion=[True, False, False]),
    )(x_flat, w_k, bias)

    # ---- un-flatten dense output, subsample for stride, back to NCHW
    BHW = B * Hp * Wp
    if Lout >= BHW:
        dense = out[:, :BHW]
    else:
        dense = jnp.pad(out, ((0, 0), (0, BHW - Lout)))
    dense = dense.reshape(Cout, B, Hp, Wp).transpose(1, 0, 2, 3)
    return dense[:, :, 0:(Hout - 1) * s + 1:s, 0:(Wout - 1) * s + 1:s]


# ------------------------- pure-JAX references -------------------------

def _reference(params, x, *, stride, padding, eps=1e-5, match_kernel_rounding=False):
    """Module math.  With match_kernel_rounding=True, the conv operands get the
    same bf16 rounding the kernel's MXU sees (tight regression check)."""
    inv = params["bn_gamma"] / jnp.sqrt(params["bn_var"] + eps)
    bias = params["bn_beta"] + inv * (params["conv_b"] - params["bn_mean"])
    w_folded = params["conv_w"] * inv[:, None, None, None]
    if match_kernel_rounding:
        w_use = w_folded.astype(jnp.bfloat16).astype(jnp.float32)
        x_use = x.astype(jnp.bfloat16).astype(jnp.float32)
    else:
        w_use, x_use = w_folded, x
    y = jax.lax.conv_general_dilated(
        x_use, w_use, window_strides=(stride, stride),
        padding=((padding, padding), (padding, padding)),
        dimension_numbers=("NCHW", "OIHW", "NCHW"),
        precision=jax.lax.Precision.HIGHEST)
    y = y + bias[None, :, None, None]
    return jnp.maximum(y, 0.0)


# ------------------------- deterministic params -------------------------

def init_params(key, in_cha, out_cha, kernel_size):
    ks = jax.random.split(key, 6)
    f32 = jnp.float32
    fan_in = in_cha * kernel_size * kernel_size
    return {
        "conv_w": jax.random.normal(ks[0], (out_cha, in_cha,
                                            kernel_size, kernel_size), f32)
                  * (fan_in ** -0.5),
        "conv_b": jax.random.normal(ks[1], (out_cha,), f32) * 0.01,
        "bn_gamma": 1.0 + 0.1 * jax.random.normal(ks[2], (out_cha,), f32),
        "bn_beta": 0.1 * jax.random.normal(ks[3], (out_cha,), f32),
        "bn_mean": 0.1 * jax.random.normal(ks[4], (out_cha,), f32),
        "bn_var": jax.random.uniform(ks[5], (out_cha,), f32, 0.5, 1.5),
    }


# ------------------------- main -------------------------

if __name__ == "__main__":
    B, in_cha, out_cha = 2, 4, 16
    H = W = 16
    kernel_size, stride, padding = 3, 1, 1

    key = jax.random.PRNGKey(0)
    k_x, k_p = jax.random.split(key)
    x = jax.random.normal(k_x, (B, in_cha, H, W), jnp.float32)
    params = init_params(k_p, in_cha, out_cha, kernel_size)

    fwd = jax.jit(functools.partial(
        basic_conv2d_forward, stride=stride, padding=padding))

    out = fwd(params, x)
    jax.block_until_ready(out)

    Hout = (H + 2 * padding - kernel_size) // stride + 1
    Wout = (W + 2 * padding - kernel_size) // stride + 1
    assert out.shape == (B, out_cha, Hout, Wout)
    assert bool(jnp.all(jnp.isfinite(out)))

    # Tight check: reference with the same bf16 operand rounding as the MXU
    # (catches layout / accumulation / indexing regressions).
    ref_tight = _reference(params, x, stride=stride, padding=padding,
                           match_kernel_rounding=True)
    err_tight = float(jnp.max(jnp.abs(out - ref_tight)))
    assert err_tight < 5e-4, f"mismatch vs bf16-matched reference: {err_tight}"

    # Sanity check vs the exact f32 module math (bounded by bf16 input rounding).
    ref_exact = _reference(params, x, stride=stride, padding=padding,
                           match_kernel_rounding=False)
    err_exact = float(jnp.max(jnp.abs(out - ref_exact)))
    assert err_exact < 5e-2, f"mismatch vs exact f32 reference: {err_exact}"

    print("KERNEL_OK")
</pallas_src>

<mosaic_0001>
module attributes {stable_mosaic.version = 11 : i64} {
  func.func @_conv_bn_relu_kernel(%arg0: memref<4x768xbf16, #tpu.memory_space<vmem>>, %arg1: memref<9x16x4xbf16, #tpu.memory_space<vmem>>, %arg2: memref<16x1xf32, #tpu.memory_space<vmem>>, %arg3: memref<16x640xf32, #tpu.memory_space<vmem>>) attributes {dimension_semantics = [], scalar_prefetch = 0 : i64, scratch_operands = 0 : i64, tpu.core_type = #tpu.core_type<tc>} {
    %c0 = arith.constant 0 : index
    %c0_0 = arith.constant 0 : index
    %0 = vector.load %arg0[%c0, %c0_0] : memref<4x768xbf16, #tpu.memory_space<vmem>>, vector<4x768xbf16>
    %cst = arith.constant 0.000000e+00 : f32
    %1 = vector.broadcast %cst : f32 to vector<16x640xf32>
    %2 = vector.extract_strided_slice %0 {offsets = [0, 0], sizes = [4, 640], strides = [1, 1]} : vector<4x768xbf16> to vector<4x640xbf16>
    %c0_1 = arith.constant 0 : index
    %c0_2 = arith.constant 0 : index
    %c0_3 = arith.constant 0 : index
    %3 = vector.load %arg1[%c0_1, %c0_2, %c0_3] : memref<9x16x4xbf16, #tpu.memory_space<vmem>>, vector<1x16x4xbf16>
    %4 = vector.shape_cast %3 : vector<1x16x4xbf16> to vector<16x4xbf16>
    %cst_4 = arith.constant dense<0.000000e+00> : vector<16x640xf32>
    %5 = tpu.matmul %4, %2, %cst_4 {dimension_numbers = #tpu.dot_dimension_numbers<[1], [0], [0], [1], [0, 0, 1, 1], [], []>} : vector<16x4xbf16>, vector<4x640xbf16>, vector<16x640xf32> -> vector<16x640xf32>
    %6 = arith.addf %1, %5 : vector<16x640xf32>
    %7 = vector.extract_strided_slice %0 {offsets = [0, 1], sizes = [4, 640], strides = [1, 1]} : vector<4x768xbf16> to vector<4x640xbf16>
    %c1 = arith.constant 1 : index
    %c0_5 = arith.constant 0 : index
    %c0_6 = arith.constant 0 : index
    %8 = vector.load %arg1[%c1, %c0_5, %c0_6] : memref<9x16x4xbf16, #tpu.memory_space<vmem>>, vector<1x16x4xbf16>
    %9 = vector.shape_cast %8 : vector<1x16x4xbf16> to vector<16x4xbf16>
    %cst_7 = arith.constant dense<0.000000e+00> : vector<16x640xf32>
    %10 = tpu.matmul %9, %7, %cst_7 {dimension_numbers = #tpu.dot_dimension_numbers<[1], [0], [0], [1], [0, 0, 1, 1], [], []>} : vector<16x4xbf16>, vector<4x640xbf16>, vector<16x640xf32> -> vector<16x640xf32>
    %11 = arith.addf %6, %10 : vector<16x640xf32>
    %12 = vector.extract_strided_slice %0 {offsets = [0, 2], sizes = [4, 640], strides = [1, 1]} : vector<4x768xbf16> to vector<4x640xbf16>
    %c2 = arith.constant 2 : index
    %c0_8 = arith.constant 0 : index
    %c0_9 = arith.constant 0 : index
    %13 = vector.load %arg1[%c2, %c0_8, %c0_9] : memref<9x16x4xbf16, #tpu.memory_space<vmem>>, vector<1x16x4xbf16>
    %14 = vector.shape_cast %13 : vector<1x16x4xbf16> to vector<16x4xbf16>
    %cst_10 = arith.constant dense<0.000000e+00> : vector<16x640xf32>
    %15 = tpu.matmul %14, %12, %cst_10 {dimension_numbers = #tpu.dot_dimension_numbers<[1], [0], [0], [1], [0, 0, 1, 1], [], []>} : vector<16x4xbf16>, vector<4x640xbf16>, vector<16x640xf32> -> vector<16x640xf32>
    %16 = arith.addf %11, %15 : vector<16x640xf32>
    %17 = vector.extract_strided_slice %0 {offsets = [0, 18], sizes = [4, 640], strides = [1, 1]} : vector<4x768xbf16> to vector<4x640xbf16>
    %c3 = arith.constant 3 : index
    %c0_11 = arith.constant 0 : index
    %c0_12 = arith.constant 0 : index
    %18 = vector.load %arg1[%c3, %c0_11, %c0_12] : memref<9x16x4xbf16, #tpu.memory_space<vmem>>, vector<1x16x4xbf16>
    %19 = vector.shape_cast %18 : vector<1x16x4xbf16> to vector<16x4xbf16>
    %cst_13 = arith.constant dense<0.000000e+00> : vector<16x640xf32>
    %20 = tpu.matmul %19, %17, %cst_13 {dimension_numbers = #tpu.dot_dimension_numbers<[1], [0], [0], [1], [0, 0, 1, 1], [], []>} : vector<16x4xbf16>, vector<4x640xbf16>, vector<16x640xf32> -> vector<16x640xf32>
    %21 = arith.addf %16, %20 : vector<16x640xf32>
    %22 = vector.extract_strided_slice %0 {offsets = [0, 19], sizes = [4, 640], strides = [1, 1]} : vector<4x768xbf16> to vector<4x640xbf16>
    %c4 = arith.constant 4 : index
    %c0_14 = arith.constant 0 : index
    %c0_15 = arith.constant 0 : index
    %23 = vector.load %arg1[%c4, %c0_14, %c0_15] : memref<9x16x4xbf16, #tpu.memory_space<vmem>>, vector<1x16x4xbf16>
    %24 = vector.shape_cast %23 : vector<1x16x4xbf16> to vector<16x4xbf16>
    %cst_16 = arith.constant dense<0.000000e+00> : vector<16x640xf32>
    %25 = tpu.matmul %24, %22, %cst_16 {dimension_numbers = #tpu.dot_dimension_numbers<[1], [0], [0], [1], [0, 0, 1, 1], [], []>} : vector<16x4xbf16>, vector<4x640xbf16>, vector<16x640xf32> -> vector<16x640xf32>
    %26 = arith.addf %21, %25 : vector<16x640xf32>
    %27 = vector.extract_strided_slice %0 {offsets = [0, 20], sizes = [4, 640], strides = [1, 1]} : vector<4x768xbf16> to vector<4x640xbf16>
    %c5 = arith.constant 5 : index
    %c0_17 = arith.constant 0 : index
    %c0_18 = arith.constant 0 : index
    %28 = vector.load %arg1[%c5, %c0_17, %c0_18] : memref<9x16x4xbf16, #tpu.memory_space<vmem>>, vector<1x16x4xbf16>
    %29 = vector.shape_cast %28 : vector<1x16x4xbf16> to vector<16x4xbf16>
    %cst_19 = arith.constant dense<0.000000e+00> : vector<16x640xf32>
    %30 = tpu.matmul %29, %27, %cst_19 {dimension_numbers = #tpu.dot_dimension_numbers<[1], [0], [0], [1], [0, 0, 1, 1], [], []>} : vector<16x4xbf16>, vector<4x640xbf16>, vector<16x640xf32> -> vector<16x640xf32>
    %31 = arith.addf %26, %30 : vector<16x640xf32>
    %32 = vector.extract_strided_slice %0 {offsets = [0, 36], sizes = [4, 640], strides = [1, 1]} : vector<4x768xbf16> to vector<4x640xbf16>
    %c6 = arith.constant 6 : index
    %c0_20 = arith.constant 0 : index
    %c0_21 = arith.constant 0 : index
    %33 = vector.load %arg1[%c6, %c0_20, %c0_21] : memref<9x16x4xbf16, #tpu.memory_space<vmem>>, vector<1x16x4xbf16>
    %34 = vector.shape_cast %33 : vector<1x16x4xbf16> to vector<16x4xbf16>
    %cst_22 = arith.constant dense<0.000000e+00> : vector<16x640xf32>
    %35 = tpu.matmul %34, %32, %cst_22 {dimension_numbers = #tpu.dot_dimension_numbers<[1], [0], [0], [1], [0, 0, 1, 1], [], []>} : vector<16x4xbf16>, vector<4x640xbf16>, vector<16x640xf32> -> vector<16x640xf32>
    %36 = arith.addf %31, %35 : vector<16x640xf32>
    %37 = vector.extract_strided_slice %0 {offsets = [0, 37], sizes = [4, 640], strides = [1, 1]} : vector<4x768xbf16> to vector<4x640xbf16>
    %c7 = arith.constant 7 : index
    %c0_23 = arith.constant 0 : index
    %c0_24 = arith.constant 0 : index
    %38 = vector.load %arg1[%c7, %c0_23, %c0_24] : memref<9x16x4xbf16, #tpu.memory_space<vmem>>, vector<1x16x4xbf16>
    %39 = vector.shape_cast %38 : vector<1x16x4xbf16> to vector<16x4xbf16>
    %cst_25 = arith.constant dense<0.000000e+00> : vector<16x640xf32>
    %40 = tpu.matmul %39, %37, %cst_25 {dimension_numbers = #tpu.dot_dimension_numbers<[1], [0], [0], [1], [0, 0, 1, 1], [], []>} : vector<16x4xbf16>, vector<4x640xbf16>, vector<16x640xf32> -> vector<16x640xf32>
    %41 = arith.addf %36, %40 : vector<16x640xf32>
    %42 = vector.extract_strided_slice %0 {offsets = [0, 38], sizes = [4, 640], strides = [1, 1]} : vector<4x768xbf16> to vector<4x640xbf16>
    %c8 = arith.constant 8 : index
    %c0_26 = arith.constant 0 : index
    %c0_27 = arith.constant 0 : index
    %43 = vector.load %arg1[%c8, %c0_26, %c0_27] : memref<9x16x4xbf16, #tpu.memory_space<vmem>>, vector<1x16x4xbf16>
    %44 = vector.shape_cast %43 : vector<1x16x4xbf16> to vector<16x4xbf16>
    %cst_28 = arith.constant dense<0.000000e+00> : vector<16x640xf32>
    %45 = tpu.matmul %44, %42, %cst_28 {dimension_numbers = #tpu.dot_dimension_numbers<[1], [0], [0], [1], [0, 0, 1, 1], [], []>} : vector<16x4xbf16>, vector<4x640xbf16>, vector<16x640xf32> -> vector<16x640xf32>
    %46 = arith.addf %41, %45 : vector<16x640xf32>
    %c0_29 = arith.constant 0 : index
    %c0_30 = arith.constant 0 : index
    %47 = vector.load %arg2[%c0_29, %c0_30] : memref<16x1xf32, #tpu.memory_space<vmem>>, vector<16x1xf32>
    %48 = vector.broadcast %47 : vector<16x1xf32> to vector<16x640xf32>
    %49 = arith.addf %46, %48 : vector<16x640xf32>
    %cst_31 = arith.constant 0.000000e+00 : f32
    %50 = vector.broadcast %cst_31 : f32 to vector<16x640xf32>
    %51 = arith.maximumf %49, %50 : vector<16x640xf32>
    %c0_32 = arith.constant 0 : index
    %c0_33 = arith.constant 0 : index
    %52 = vector.load %arg3[%c0_32, %c0_33] : memref<16x640xf32, #tpu.memory_space<vmem>>, vector<16x640xf32>
    tpu.vector_store %arg3[%c0_32, %c0_33], %51 {strides = array<i32>} : memref<16x640xf32, #tpu.memory_space<vmem>>, vector<16x640xf32>,
    return
  }
}

</mosaic_0001>

<bundles_post_ra>
// kernel: basic_conv2d_forward.2
= control target key start
LH: loop header
LB: loop body
LE: loop exit
PB: predicated region body
PF: predicated region fallthrough
CT: control target
= control target key end

     0   :  { %s1872_s0 = inlined_call_operand.vmem [shape: bf16[9,16,4], index: 0, kind: input, shape index: {}]   ;;  %s1873_s1 = inlined_call_operand.vmem [shape: f32[16,1], index: 1, kind: input, shape index: {}]   ;;  %s1874_s2 = inlined_call_operand.vmem [shape: bf16[4,648], index: 2, kind: input, shape index: {}]   ;;  %s1875_s3 = inlined_call_operand.<no memory space> [shape: bf16[], index: 3, kind: input, shape index: {}]   ;;  %s1876_s4 = inlined_call_operand.vmem [shape: f32[16,640], index: 4, kind: output, shape index: {}]  }
   0x1   :  { %v9_v0 = vstv %s1875_s3 }
   0x2   :  { %v10_v1 = vunpack.i.l.bf16 %v9_v0 }
   0x3   :  { %v26_v2 = vld [vmem:[%s1874_s2] sm:$0x3]  ;;  %v29_v3 = vlaneseq  ;;  %v1421_v4 = vld [vmem:[%s1874_s2 + $0x2] sm:$0x3]  ;;  %v1422_v5 = vld [vmem:[%s1874_s2 + $0x4] sm:$0x3] }
   0x4   :  { %v27_v6 = vunpack.c.l.bf16 %v26_v2  ;;  %v51_v7 = vunpack.c.l.bf16 %v1421_v4  ;;  %v76_v8 = vunpack.c.l.bf16 %v1422_v5  ;;  %v1423_v9 = vld [vmem:[%s1874_s2 + $0x6] sm:$0x3]  ;;  %v1424_v12 = vld [vmem:[%s1874_s2 + $0x8] sm:$0x3]  ;;  %v1425_v13 = vld [vmem:[%s1874_s2 + $0xa] sm:$0x3] }
   0x5   :  { %v30_v10 = vshrl.u32 %v29_v3, 7  ;;  %v101_v11 = vunpack.c.l.bf16 %v1423_v9  ;;  %v159_v14 = vand.u32 127, %v29_v3  ;;  %v126_v15 = vunpack.c.l.bf16 %v1424_v12  ;;  %s1543_s2 = smov 127   ;;  %s1544_s28 = smov 126  }
   0x6   :  { %v151_v16 = vunpack.c.l.bf16 %v1425_v13  ;;  %s1545_s29 = smov 110   ;;  %s1546_s30 = smov 109   ;;  %vm210_vm2 = vcmask 1039360   ;;  %vm220_vm3 = vcmask 1041408   ;;  %vm216_vm4 = vcmask 31744  }
   0x7   :  { %vm32_vm0 = vcmp.lt.s32.totalorder %v30_v10, 4  ;;  %v160_v27 = vadd.s32 640, %v159_v14  ;;  %s1547_s5 = smov 108   ;;  %s1548_s6 = smov 92   ;;  %vm437_vm5 = vcmask 1031168   ;;  %vm576_vm6 = vcmask 900096  }
   0x8   :  { %v33_v17 = vsel %vm32_vm0, %v27_v6, %v10_v1  ;;  %v57_v18 = vsel %vm32_vm0, %v51_v7, %v10_v1  ;;  %v82_v19 = vsel %vm32_vm0, %v76_v8, %v10_v1  ;;  %v107_v20 = vsel %vm32_vm0, %v101_v11, %v10_v1  ;;  %s1549_s7 = smov 91   ;;  %s1550_s8 = smov 90  }
   0x9   :  { %v39_v21 = vpack.c.bf16 0.0, %v33_v17  ;;  %v64_v22 = vpack.c.bf16 0.0, %v57_v18  ;;  %v89_v23 = vpack.c.bf16 0.0, %v82_v19  ;;  %v114_v24 = vpack.c.bf16 0.0, %v107_v20 }
   0xa   :  { %v132_v25 = vsel %vm32_vm0, %v126_v15, %v10_v1  ;;  %v157_v26 = vsel %vm32_vm0, %v151_v16, %v10_v1  ;;  %vm161_vm1 = vcmp.lt.s32.totalorder %v160_v27, 648  ;;  %vm715_vm7 = vcmask 891904  }
   0xb   :  { %42 = vst [vmem:[#allocation7] sm:$0x3] %v39_v21  ;;  %v139_v28 = vpack.c.bf16 0.0, %v132_v25  ;;  %v162_v29 = vsel %vm161_vm1, %v157_v26, %v10_v1  ;;  %vm854_vm8 = vcmask 883712   ;;  %vm993_vm9 = vcmask 752640  }
   0xc   :  { %67 = vst [vmem:[#allocation7 + $0x2] sm:$0x3] %v64_v22  ;;  %v164_v30 = vpack.c.bf16 0.0, %v162_v29  ;;  %vm1132_vm10 = vcmask 744448   ;;  %vm1271_vm11 = vcmask 736256  }
   0xd   :  { %92 = vst [vmem:[#allocation7 + $0x4] sm:$0x3] %v89_v23 }
   0xe   :  { %117 = vst [vmem:[#allocation7 + $0x6] sm:$0x3] %v114_v24 }
   0xf   :  { %142 = vst [vmem:[#allocation7 + $0x8] sm:$0x3] %v139_v28 }
  0x10   :  { %167 = vst [vmem:[#allocation7 + $0xa] sm:$0x3] %v164_v30 }
  0x15   :  { %v1598_v31 = vld [vmem:[#allocation7] sm:$0xff] }
  0x16   :  { %182 = vst [vmem:[#allocation1] ss:$4 sm:$0xff] %v1598_v31 }
  0x17   :  { %v1601_v32 = vld [vmem:[#allocation7 + $0x8] sm:$0xf] }
  0x18   :  { %185 = vst [vmem:[#allocation1 + $0x20] ss:$4 sm:$0xff] %v1601_v32 }
  0x1d   :  { %v190_v33 = vld.sshfl [vmem:[#allocation1 + $0x10] sm:$0xff pattern:$0x73625140]  ;;  %v186_v34 = vld.sshfl [vmem:[#allocation1] sm:$0xff pattern:$0x73625140] }
  0x1e   :  { %202 = vrot.lane.b32.xlu1 %v190_v33, %s1543_s2  ;;  %198 = vrot.lane.b32.xlu0 %v186_v34, %s1543_s2  ;;  %v192_v35 = vld.sshfl [vmem:[#allocation1 + $0x18] sm:$0xff pattern:$0x73625140]  ;;  %v188_v36 = vld.sshfl [vmem:[#allocation1 + $0x8] sm:$0xff pattern:$0x73625140] }
  0x1f   :  { %311 = vst [vmem:[#allocation1] ss:$4 sm:$0xff] %v1598_v31  ;;  %v194_v37 = vld.sshfl [vmem:[#allocation1 + $0x20] sm:$0xff pattern:$0x73625140] }
  0x20   :  { %206 = vrot.lane.b32.xlu2 %v194_v37, %s1543_s2  ;;  %v196_v38 = vld.sshfl [vmem:[#allocation1 + $0x28] sm:$0xff pattern:$0x73625140] }
  0x21   :  { %313 = vst [vmem:[#allocation1 + $0x20] ss:$4 sm:$0xff] %v1601_v32 }
  0x26   :  { %204 = vrot.lane.b32.xlu1 %v192_v35, %s1543_s2  ;;  %200 = vrot.lane.b32.xlu0 %v188_v36, %s1543_s2  ;;  %v1606_v39 = vld.sshfl [vmem:[#allocation1] sm:$0xff pattern:$0x73625140]  ;;  %v1608_v40 = vld.sshfl [vmem:[#allocation1 + $0x8] sm:$0xff pattern:$0x73625140] }
  0x27   :  { %v1610_v41 = vld.sshfl [vmem:[#allocation1 + $0x10] sm:$0xff pattern:$0x73625140]  ;;  %v1612_v42 = vld.sshfl [vmem:[#allocation1 + $0x18] sm:$0xff pattern:$0x73625140] }
  0x28   :  { %208 = vrot.lane.b32.xlu2 %v196_v38, %s1543_s2  ;;  %410 = vst [vmem:[#allocation1] ss:$4 sm:$0xff] %v1598_v31  ;;  %v1615_v43 = vld.sshfl [vmem:[#allocation1 + $0x20] sm:$0xff pattern:$0x73625140]  ;;  %v324_v26 = vsel %vm220_vm3, %v1608_v40, 0 }
  0x29   :  { %412 = vst [vmem:[#allocation1 + $0x20] ss:$4 sm:$0xff] %v1601_v32  ;;  %v1524_v35 = vld [vmem:[%s1872_s0 + $0x8] sm:$0xff]  ;;  %v326_v37 = vsel %vm220_vm3, %v1610_v41, 0  ;;  %v322_v38 = vsel %vm220_vm3, %v1606_v39, 0  ;;  %v328_v40 = vsel %vm220_vm3, %v1612_v42, 0 }
  0x2f   :  { %v413_v44 = vld.sshfl [vmem:[#allocation1] sm:$0xff pattern:$0x73625140]  ;;  %v417_v45 = vld.sshfl [vmem:[#allocation1 + $0x10] sm:$0xff pattern:$0x73625140] }
  0x30   :  { %425 = vrot.lane.b32.xlu0 %v413_v44, %s1544_s28  ;;  %v415_v46 = vld.sshfl [vmem:[#allocation1 + $0x8] sm:$0xff pattern:$0x73625140]  ;;  %v419_v47 = vld.sshfl [vmem:[#allocation1 + $0x18] sm:$0xff pattern:$0x73625140]  ;;  %429 = vrot.lane.b32.xlu2 %v417_v45, %s1544_s28 }
  0x31   :  { %427 = vrot.lane.b32.xlu1 %v415_v46, %s1544_s28  ;;  %549 = vst [vmem:[#allocation1] ss:$4 sm:$0xff] %v1598_v31  ;;  %v421_v48 = vld.sshfl [vmem:[#allocation1 + $0x20] sm:$0xff pattern:$0x73625140]  ;;  %v330_v44 = vsel %vm220_vm3, %v1615_v43, 0 }
  0x32   :  { %v423_v49 = vld.sshfl [vmem:[#allocation1 + $0x28] sm:$0xff pattern:$0x73625140] }
  0x33   :  { %551 = vst [vmem:[#allocation1 + $0x20] ss:$4 sm:$0xff] %v1601_v32 }
  0x38   :  { %431 = vrot.lane.b32.xlu0 %v419_v47, %s1544_s28  ;;  %v552_v50 = vld.sshfl [vmem:[#allocation1] sm:$0xff pattern:$0x73625140]  ;;  %v556_v51 = vld.sshfl [vmem:[#allocation1 + $0x10] sm:$0xff pattern:$0x73625140]  ;;  %435 = vrot.lane.b32.xlu2 %v423_v49, %s1544_s28 }
  0x39   :  { %433 = vrot.lane.b32.xlu1 %v421_v48, %s1544_s28  ;;  %v554_v52 = vld.sshfl [vmem:[#allocation1 + $0x8] sm:$0xff pattern:$0x73625140]  ;;  %v558_v53 = vld.sshfl [vmem:[#allocation1 + $0x18] sm:$0xff pattern:$0x73625140] }
  0x3a   :  { %688 = vst [vmem:[#allocation1] ss:$4 sm:$0xff] %v1598_v31  ;;  %v560_v54 = vld.sshfl [vmem:[#allocation1 + $0x20] sm:$0xff pattern:$0x73625140] }
  0x3b   :  { %v562_v55 = vld.sshfl [vmem:[#allocation1 + $0x28] sm:$0xff pattern:$0x73625140] }
  0x3c   :  { %690 = vst [vmem:[#allocation1 + $0x20] ss:$4 sm:$0xff] %v1601_v32 }
  0x40   :  { %564 = vrot.lane.b32.xlu0 %v552_v50, %s1545_s29  ;;  %568 = vrot.lane.b32.xlu2 %v556_v51, %s1545_s29  ;;  %v1523_v50 = vld [vmem:[%s1872_s0] sm:$0xff] }
  0x41   :  { %566 = vrot.lane.b32.xlu1 %v554_v52, %s1545_s29  ;;  %v693_v56 = vld.sshfl [vmem:[#allocation1 + $0x8] sm:$0xff pattern:$0x73625140]  ;;  %v695_v57 = vld.sshfl [vmem:[#allocation1 + $0x10] sm:$0xff pattern:$0x73625140] }
  0x42   :  { %v691_v58 = vld.sshfl [vmem:[#allocation1] sm:$0xff pattern:$0x73625140]  ;;  %v697_v59 = vld.sshfl [vmem:[#allocation1 + $0x18] sm:$0xff pattern:$0x73625140] }
  0x43   :  { %v701_v60 = vld.sshfl [vmem:[#allocation1 + $0x28] sm:$0xff pattern:$0x73625140]  ;;  %827 = vst [vmem:[#allocation1] ss:$4 sm:$0xff] %v1598_v31 }
  0x44   :  { %v699_v61 = vld.sshfl [vmem:[#allocation1 + $0x20] sm:$0xff pattern:$0x73625140] }
  0x45   :  { %829 = vst [vmem:[#allocation1 + $0x20] ss:$4 sm:$0xff] %v1601_v32 }
  0x48   :  { %570 = vrot.lane.b32.xlu0 %v558_v53, %s1545_s29  ;;  %574 = vrot.lane.b32.xlu2 %v562_v55, %s1545_s29 }
  0x49   :  { %572 = vrot.lane.b32.xlu1 %v560_v54, %s1545_s29 }
  0x4a   :  { %v836_v62 = vld.sshfl [vmem:[#allocation1 + $0x18] sm:$0xff pattern:$0x73625140]  ;;  %v832_v63 = vld.sshfl [vmem:[#allocation1 + $0x8] sm:$0xff pattern:$0x73625140] }
  0x4b   :  { %v834_v0 = vld.sshfl [vmem:[#allocation1 + $0x10] sm:$0xff pattern:$0x73625140]  ;;  %v830_v1 = vld.sshfl [vmem:[#allocation1] sm:$0xff pattern:$0x73625140] }
  0x4c   :  { %966 = vst [vmem:[#allocation1] ss:$4 sm:$0xff] %v1598_v31  ;;  %v838_v2 = vld.sshfl [vmem:[#allocation1 + $0x20] sm:$0xff pattern:$0x73625140] }
  0x4d   :  { %v840_v3 = vld.sshfl [vmem:[#allocation1 + $0x28] sm:$0xff pattern:$0x73625140] }
  0x4e   :  { %968 = vst [vmem:[#allocation1 + $0x20] ss:$4 sm:$0xff] %v1601_v32 }
  0x50   :  { %703 = vrot.lane.b32.xlu0 %v691_v58, %s1546_s30  ;;  %707 = vrot.lane.b32.xlu2 %v695_v57, %s1546_s30 }
  0x51   :  { %705 = vrot.lane.b32.xlu1 %v693_v56, %s1546_s30 }
  0x53   :  { %v971_v4 = vld.sshfl [vmem:[#allocation1 + $0x8] sm:$0xff pattern:$0x73625140]  ;;  %v973_v5 = vld.sshfl [vmem:[#allocation1 + $0x10] sm:$0xff pattern:$0x73625140] }
  0x54   :  { %v975_v6 = vld.sshfl [vmem:[#allocation1 + $0x18] sm:$0xff pattern:$0x73625140]  ;;  %v969_v9 = vld.sshfl [vmem:[#allocation1] sm:$0xff pattern:$0x73625140] }
  0x55   :  { %v977_v7 = vld.sshfl [vmem:[#allocation1 + $0x20] sm:$0xff pattern:$0x73625140]  ;;  %v979_v8 = vld.sshfl [vmem:[#allocation1 + $0x28] sm:$0xff pattern:$0x73625140] }
  0x56   :  { %1107 = vst [vmem:[#allocation1 + $0x20] ss:$4 sm:$0xff] %v1601_v32 }
  0x57   :  { %1105 = vst [vmem:[#allocation1] ss:$4 sm:$0xff] %v1598_v31 }
  0x58   :  { %709 = vrot.lane.b32.xlu0 %v697_v59, %s1546_s30  ;;  %713 = vrot.lane.b32.xlu2 %v701_v60, %s1546_s30 }
  0x59   :  { %711 = vrot.lane.b32.xlu1 %v699_v61, %s1546_s30 }
  0x5d   :  { %v1116_v15 = vld.sshfl [vmem:[#allocation1 + $0x20] sm:$0xff pattern:$0x73625140]  ;;  %v1118_v18 = vld.sshfl [vmem:[#allocation1 + $0x28] sm:$0xff pattern:$0x73625140] }
  0x5e   :  { %v1112_v10 = vld.sshfl [vmem:[#allocation1 + $0x10] sm:$0xff pattern:$0x73625140]  ;;  %v1108_v11 = vld.sshfl [vmem:[#allocation1] sm:$0xff pattern:$0x73625140] }
  0x5f   :  { %v1110_v12 = vld.sshfl [vmem:[#allocation1 + $0x8] sm:$0xff pattern:$0x73625140]  ;;  %v1114_v13 = vld.sshfl [vmem:[#allocation1 + $0x18] sm:$0xff pattern:$0x73625140] }
  0x60   :  { %844 = vrot.lane.b32.xlu0 %v832_v63, %s1547_s5  ;;  %848 = vrot.lane.b32.xlu2 %v836_v62, %s1547_s5  ;;  %1244 = vst [vmem:[#allocation1] ss:$4 sm:$0xff] %v1598_v31 }
  0x61   :  { %846 = vrot.lane.b32.xlu1 %v834_v0, %s1547_s5  ;;  %1246 = vst [vmem:[#allocation1 + $0x20] ss:$4 sm:$0xff] %v1601_v32 }
  0x67   :  { %v1247_v19 = vld.sshfl [vmem:[#allocation1] sm:$0xff pattern:$0x73625140]  ;;  %v1249_v22 = vld.sshfl [vmem:[#allocation1 + $0x8] sm:$0xff pattern:$0x73625140] }
  0x68   :  { %842 = vrot.lane.b32.xlu0 %v830_v1, %s1547_s5  ;;  %981 = vrot.lane.b32.xlu2 %v969_v9, %s1548_s6  ;;  %v1253_v45 = vld.sshfl [vmem:[#allocation1 + $0x18] sm:$0xff pattern:$0x73625140]  ;;  %v1255_v46 = vld.sshfl [vmem:[#allocation1 + $0x20] sm:$0xff pattern:$0x73625140] }
  0x69   :  { %850 = vrot.lane.b32.xlu1 %v838_v2, %s1547_s5  ;;  %v1251_v60 = vld.sshfl [vmem:[#allocation1 + $0x10] sm:$0xff pattern:$0x73625140]  ;;  %v1257_v1 = vld.sshfl [vmem:[#allocation1 + $0x28] sm:$0xff pattern:$0x73625140] }
  0x70   :  { %983 = vrot.lane.b32.xlu0 %v971_v4, %s1548_s6  ;;  %852 = vrot.lane.b32.xlu2 %v840_v3, %s1547_s5 }
  0x71   :  { %985 = vrot.lane.b32.xlu1 %v973_v5, %s1548_s6  ;;  %v1525_v5 = vld [vmem:[%s1872_s0 + $0x10] sm:$0xff] }
  0x78   :  { %987 = vrot.lane.b32.xlu0 %v975_v6, %s1548_s6  ;;  %991 = vrot.lane.b32.xlu2 %v979_v8, %s1548_s6 }
  0x79   :  { %989 = vrot.lane.b32.xlu1 %v977_v7, %s1548_s6 }
  0x7a   :  { %v207_v14 = vpop.permute.xlu2 %206 }
  0x80   :  { %1120 = vrot.lane.b32.xlu0 %v1108_v11, %s1549_s7  ;;  %1124 = vrot.lane.b32.xlu2 %v1112_v10, %s1549_s7 }
  0x81   :  { %1122 = vrot.lane.b32.xlu1 %v1110_v12, %s1549_s7 }
  0x82   :  { %v209_v20 = vpop.permute.xlu2 %208 }
  0x83   :  { %v215_v21 = vsel %vm210_vm2, %v207_v14, %v209_v20 }
  0x84   :  { %v234_v25 = vsel %vm220_vm3, %v215_v21, 0  ;;  %v1526_v21 = vld [vmem:[%s1872_s0 + $0x18] sm:$0xff] }
  0x88   :  { %1126 = vrot.lane.b32.xlu0 %v1114_v13, %s1549_s7  ;;  %1130 = vrot.lane.b32.xlu2 %v1118_v18, %s1549_s7 }
  0x89   :  { %1128 = vrot.lane.b32.xlu1 %v1116_v15, %s1549_s7 }
  0x8a   :  { %v430_v36 = vpop.permute.xlu2 %429 }
  0x90   :  { %v203_v16 = vpop.permute.xlu1 %202  ;;  %v199_v17 = vpop.permute.xlu0 %198  ;;  %1259 = vrot.lane.b32.xlu0 %v1247_v19, %s1550_s8  ;;  %1263 = vrot.lane.b32.xlu2 %v1251_v60, %s1550_s8  ;;  %v1528_v60 = vld [vmem:[%s1872_s0 + $0x28] sm:$0xff] }
  0x91   :  { %1261 = vrot.lane.b32.xlu1 %v1249_v22, %s1550_s8 }
  0x92   :  { %v436_v42 = vpop.permute.xlu2 %435 }
  0x98   :  { %v205_v23 = vpop.permute.xlu1 %204  ;;  %v201_v24 = vpop.permute.xlu0 %200  ;;  %1265 = vrot.lane.b32.xlu0 %v1253_v45, %s1550_s8  ;;  %1269 = vrot.lane.b32.xlu2 %v1257_v1, %s1550_s8 }
  0x99   :  { %v211_v27 = vsel %vm210_vm2, %v199_v17, %v201_v24  ;;  %v212_v28 = vsel %vm210_vm2, %v201_v24, %v203_v16  ;;  %v213_v29 = vsel %vm210_vm2, %v203_v16, %v205_v23  ;;  %v214_v30 = vsel %vm210_vm2, %v205_v23, %v207_v14  ;;  %1267 = vrot.lane.b32.xlu1 %v1255_v46, %s1550_s8 }
  0x9a   :  { %v222_v31 = vsel %vm220_vm3, %v211_v27, 0  ;;  %v225_v32 = vsel %vm220_vm3, %v212_v28, 0  ;;  %v228_v33 = vsel %vm220_vm3, %v213_v29, 0  ;;  %v231_v34 = vsel %vm220_vm3, %v214_v30, 0  ;;  %v569_v58 = vpop.permute.xlu2 %568 }
  0x9b   :  { %243 = vmatpush.bf16.msra.mxu0 %v222_v31  ;;  %257 = vmatpush.bf16.msra.mxu1 %v225_v32 }
  0x9c   :  { %271 = vmatpush.bf16.msra.mxu2 %v228_v33  ;;  %285 = vmatpush.bf16.msra.mxu3 %v231_v34 }
  0x9e   :  { %1432 = vmatmul.msk.bf16.vlgmr.msra.gmra.mxu0 %vm216_vm4, %v1524_v35  ;;  %1433 = vmatmul.msk.bf16.vlgmr.msra.gmra.mxu1 %vm216_vm4, %v1524_v35 }
  0x9f   :  { %299 = vmatpush.bf16.msrb.mxu0 %v234_v25  ;;  %1434 = vmatmul.msk.bf16.vlgmr.msra.gmra.mxu2 %vm216_vm4, %v1524_v35 }
  0xa0   :  { %353 = vmatpush.bf16.msrb.mxu2 %v324_v26  ;;  %1435 = vmatmul.msk.bf16.vlgmr.msra.gmra.mxu3 %vm216_vm4, %v1524_v35 }
  0xa1   :  { %367 = vmatpush.bf16.msrb.mxu3 %v326_v37  ;;  %339 = vmatpush.bf16.msrb.mxu1 %v322_v38 }
  0xa2   :  { %v426_v39 = vpop.permute.xlu0 %425  ;;  %v575_v2 = vpop.permute.xlu2 %574 }
  0xa3   :  { %381 = vmatpush.bf16.msra.mxu0 %v328_v40  ;;  %v428_v41 = vpop.permute.xlu1 %427 }
  0xa4   :  { %v438_v43 = vsel %vm437_vm5, %v426_v39, %v428_v41  ;;  %v439_v47 = vsel %vm437_vm5, %v428_v41, %v430_v36 }
  0xa5   :  { %395 = vmatpush.bf16.msra.mxu1 %v330_v44  ;;  %v447_v48 = vsel %vm220_vm3, %v438_v43, 0  ;;  %v450_v49 = vsel %vm220_vm3, %v439_v47, 0  ;;  %v1527_v43 = vld [vmem:[%s1872_s0 + $0x20] sm:$0xff] }
  0xa6   :  { %468 = vmatpush.bf16.msra.mxu2 %v447_v48  ;;  %482 = vmatpush.bf16.msra.mxu3 %v450_v49 }
  0xaa   :  { %v432_v51 = vpop.permute.xlu0 %431  ;;  %v708_v14 = vpop.permute.xlu2 %707 }
  0xab   :  { %v440_v52 = vsel %vm437_vm5, %v430_v36, %v432_v51  ;;  %v434_v53 = vpop.permute.xlu1 %433 }
  0xac   :  { %v441_v54 = vsel %vm437_vm5, %v432_v51, %v434_v53  ;;  %v442_v55 = vsel %vm437_vm5, %v434_v53, %v436_v42  ;;  %v453_v56 = vsel %vm220_vm3, %v440_v52, 0 }
  0xad   :  { %v456_v57 = vsel %vm220_vm3, %v441_v54, 0  ;;  %v459_v59 = vsel %vm220_vm3, %v442_v55, 0 }
  0xae   :  { %1436 = vmatmul.msk.bf16.vlgmr.msrb.gmra.mxu0 %vm216_vm4, %v1524_v35  ;;  %1441 = vmatmul.msk.bf16.vlgmr.msrb.gmra.mxu1 %vm216_vm4, %v1523_v50 }
  0xaf   :  { %1442 = vmatmul.msk.bf16.vlgmr.msrb.gmra.mxu2 %vm216_vm4, %v1523_v50  ;;  %496 = vmatpush.bf16.msrb.mxu0 %v453_v56 }
  0xb0   :  { %1443 = vmatmul.msk.bf16.vlgmr.msrb.gmra.mxu3 %vm216_vm4, %v1523_v50  ;;  %510 = vmatpush.bf16.msrb.mxu1 %v456_v57 }
  0xb1   :  { %524 = vmatpush.bf16.msrb.mxu2 %v459_v59 }
  0xb2   :  { %v565_v61 = vpop.permute.xlu0 %564  ;;  %v714_v17 = vpop.permute.xlu2 %713 }
  0xb3   :  { %v567_v62 = vpop.permute.xlu1 %566 }
  0xb4   :  { %v577_v63 = vsel %vm576_vm6, %v565_v61, %v567_v62  ;;  %v578_v3 = vsel %vm576_vm6, %v567_v62, %v569_v58 }
  0xb5   :  { %v586_v0 = vsel %vm220_vm3, %v577_v63, 0  ;;  %v589_v10 = vsel %vm220_vm3, %v578_v3, 0 }
  0xb6   :  { %607 = vmatpush.bf16.msrb.mxu3 %v586_v0 }
  0xba   :  { %v571_v4 = vpop.permute.xlu0 %570  ;;  %v849_v30 = vpop.permute.xlu2 %848 }
  0xbb   :  { %v579_v6 = vsel %vm576_vm6, %v569_v58, %v571_v4  ;;  %v573_v7 = vpop.permute.xlu1 %572 }
  0xbc   :  { %v580_v8 = vsel %vm576_vm6, %v571_v4, %v573_v7  ;;  %v581_v9 = vsel %vm576_vm6, %v573_v7, %v575_v2  ;;  %v592_v11 = vsel %vm220_vm3, %v579_v6, 0 }
  0xbd   :  { %v595_v12 = vsel %vm220_vm3, %v580_v8, 0  ;;  %v598_v13 = vsel %vm220_vm3, %v581_v9, 0 }
  0xbe   :  { %1444 = vmatmul.msk.bf16.vlgmr.msra.gmra.mxu0 %vm216_vm4, %v1523_v50  ;;  %1445 = vmatmul.msk.bf16.vlgmr.msra.gmra.mxu1 %vm216_vm4, %v1523_v50 }
  0xbf   :  { %1452 = vmatmul.msk.bf16.vlgmr.msra.gmra.mxu2 %vm216_vm4, %v1525_v5  ;;  %621 = vmatpush.bf16.msra.mxu0 %v589_v10 }
  0xc0   :  { %1453 = vmatmul.msk.bf16.vlgmr.msra.gmra.mxu3 %vm216_vm4, %v1525_v5  ;;  %635 = vmatpush.bf16.msra.mxu1 %v592_v11  ;;  %v1529_v11 = vld [vmem:[%s1872_s0 + $0x30] sm:$0xff] }
  0xc1   :  { %649 = vmatpush.bf16.msra.mxu2 %v595_v12  ;;  %663 = vmatpush.bf16.msra.mxu3 %v598_v13 }
  0xc2   :  { %v704_v15 = vpop.permute.xlu0 %703  ;;  %v982_v44 = vpop.permute.xlu2 %981 }
  0xc3   :  { %v706_v16 = vpop.permute.xlu1 %705 }
  0xc4   :  { %v717_v18 = vsel %vm715_vm7, %v706_v16, %v708_v14  ;;  %v716_v19 = vsel %vm715_vm7, %v704_v15, %v706_v16 }
  0xc5   :  { %v728_v25 = vsel %vm220_vm3, %v717_v18, 0  ;;  %v725_v26 = vsel %vm220_vm3, %v716_v19, 0 }
  0xca   :  { %v710_v20 = vpop.permute.xlu0 %709  ;;  %v853_v42 = vpop.permute.xlu2 %852 }
  0xcb   :  { %v718_v22 = vsel %vm715_vm7, %v708_v14, %v710_v20  ;;  %v712_v23 = vpop.permute.xlu1 %711 }
  0xcc   :  { %v719_v24 = vsel %vm715_vm7, %v710_v20, %v712_v23  ;;  %v731_v27 = vsel %vm220_vm3, %v718_v22, 0  ;;  %v720_v32 = vsel %vm715_vm7, %v712_v23, %v714_v17 }
  0xcd   :  { %v734_v28 = vsel %vm220_vm3, %v719_v24, 0  ;;  %v737_v38 = vsel %vm220_vm3, %v720_v32, 0 }
  0xce   :  { %1454 = vmatmul.msk.bf16.vlgmr.msrb.gmra.mxu0 %vm216_vm4, %v1525_v5  ;;  %1455 = vmatmul.msk.bf16.vlgmr.msrb.gmra.mxu1 %vm216_vm4, %v1525_v5 }
  0xcf   :  { %1456 = vmatmul.msk.bf16.vlgmr.msrb.gmra.mxu2 %vm216_vm4, %v1525_v5  ;;  %746 = vmatpush.bf16.msrb.mxu0 %v725_v26 }
  0xd0   :  { %1463 = vmatmul.msk.bf16.vlgmr.msrb.gmra.mxu3 %vm216_vm4, %v1526_v21  ;;  %760 = vmatpush.bf16.msrb.mxu1 %v728_v25 }
  0xd1   :  { %774 = vmatpush.bf16.msrb.mxu2 %v731_v27  ;;  %788 = vmatpush.bf16.msrb.mxu3 %v734_v28  ;;  %v1530_v27 = vld [vmem:[%s1872_s0 + $0x38] sm:$0xff] }
  0xd2   :  { %v845_v29 = vpop.permute.xlu0 %844  ;;  %v992_v57 = vpop.permute.xlu2 %991 }
  0xd3   :  { %v847_v31 = vpop.permute.xlu1 %846 }
  0xd4   :  { %v856_v34 = vsel %vm854_vm8, %v845_v29, %v847_v31  ;;  %v857_v35 = vsel %vm854_vm8, %v847_v31, %v849_v30 }
  0xd5   :  { %v867_v45 = vsel %vm220_vm3, %v856_v34, 0  ;;  %v870_v46 = vsel %vm220_vm3, %v857_v35, 0 }
  0xda   :  { %v843_v33 = vpop.permute.xlu0 %842  ;;  %v1125_v4 = vpop.permute.xlu2 %1124 }
  0xdb   :  { %v855_v36 = vsel %vm854_vm8, %v843_v33, %v845_v29  ;;  %v851_v37 = vpop.permute.xlu1 %850 }
  0xdc   :  { %v864_v40 = vsel %vm220_vm3, %v855_v36, 0  ;;  %v858_v47 = vsel %vm854_vm8, %v849_v30, %v851_v37  ;;  %v859_v48 = vsel %vm854_vm8, %v851_v37, %v853_v42  ;;  %v1375_v42 = vld [vmem:[%s1873_s1] sm:$0xff] }
  0xdd   :  { %v873_v51 = vsel %vm220_vm3, %v858_v47, 0  ;;  %v876_v52 = vsel %vm220_vm3, %v859_v48, 0 }
  0xde   :  { %1464 = vmatmul.msk.bf16.vlgmr.msra.gmra.mxu0 %vm216_vm4, %v1526_v21  ;;  %1465 = vmatmul.msk.bf16.vlgmr.msra.gmra.mxu1 %vm216_vm4, %v1526_v21 }
  0xdf   :  { %1466 = vmatmul.msk.bf16.vlgmr.msra.gmra.mxu2 %vm216_vm4, %v1526_v21  ;;  %802 = vmatpush.bf16.msra.mxu0 %v737_v38 }
  0xe0   :  { %1467 = vmatmul.msk.bf16.vlgmr.msra.gmra.mxu3 %vm216_vm4, %v1526_v21  ;;  %885 = vmatpush.bf16.msra.mxu1 %v864_v40 }
  0xe1   :  { %899 = vmatpush.bf16.msra.mxu2 %v867_v45  ;;  %913 = vmatpush.bf16.msra.mxu3 %v870_v46 }
  0xe2   :  { %v984_v39 = vpop.permute.xlu0 %983  ;;  %v1131_v8 = vpop.permute.xlu2 %1130 }
  0xe3   :  { %v986_v41 = vpop.permute.xlu1 %985  ;;  %v994_v49 = vsel %vm993_vm9, %v982_v44, %v984_v39 }
  0xe4   :  { %v995_v50 = vsel %vm993_vm9, %v984_v39, %v986_v41  ;;  %v1003_v53 = vsel %vm220_vm3, %v994_v49, 0 }
  0xe5   :  { %v1006_v54 = vsel %vm220_vm3, %v995_v50, 0 }
  0xea   :  { %v988_v55 = vpop.permute.xlu0 %987  ;;  %v1264_v20 = vpop.permute.xlu2 %1263 }
  0xeb   :  { %v990_v56 = vpop.permute.xlu1 %989  ;;  %v996_v61 = vsel %vm993_vm9, %v986_v41, %v988_v55  ;;  %v1551_v41 = vmov 0  }
  0xec   :  { %v997_v62 = vsel %vm993_vm9, %v988_v55, %v990_v56  ;;  %v998_v63 = vsel %vm993_vm9, %v990_v56, %v992_v57  ;;  %v1009_v1 = vsel %vm220_vm3, %v996_v61, 0  ;;  %1541 = vset.pattern.permute.xlu0 %v1551_v41  ;;  %1542 = vset.pattern.permute.xlu1 %v1551_v41 }
  0xed   :  { %v1012_v2 = vsel %vm220_vm3, %v997_v62, 0  ;;  %v1015_v3 = vsel %vm220_vm3, %v998_v63, 0  ;;  %1379 = vperm.xlu0 %1541, %v1375_v42  }
  0xee   :  { %1474 = vmatmul.msk.bf16.vlgmr.msrb.gmra.mxu0 %vm216_vm4, %v1527_v43  ;;  %1475 = vmatmul.msk.bf16.vlgmr.msrb.gmra.mxu1 %vm216_vm4, %v1527_v43 }
  0xef   :  { %1476 = vmatmul.msk.bf16.vlgmr.msrb.gmra.mxu2 %vm216_vm4, %v1527_v43  ;;  %927 = vmatpush.bf16.msrb.mxu0 %v873_v51 }
  0xf0   :  { %1477 = vmatmul.msk.bf16.vlgmr.msrb.gmra.mxu3 %vm216_vm4, %v1527_v43  ;;  %941 = vmatpush.bf16.msrb.mxu1 %v876_v52 }
  0xf1   :  { %1024 = vmatpush.bf16.msrb.mxu2 %v1003_v53  ;;  %1038 = vmatpush.bf16.msrb.mxu3 %v1006_v54  ;;  %v1376_v54 = vld [vmem:[%s1873_s1 + $0x8] sm:$0xff] }
  0xf2   :  { %v1121_v58 = vpop.permute.xlu0 %1120  ;;  %v1270_v38 = vpop.permute.xlu2 %1269  ;;  %1384 = vperm.xlu1 %1542, %v1376_v54  }
  0xf3   :  { %v1123_v59 = vpop.permute.xlu1 %1122 }
  0xf4   :  { %v1133_v0 = vsel %vm1132_vm10, %v1121_v58, %v1123_v59  ;;  %v1134_v9 = vsel %vm1132_vm10, %v1123_v59, %v1125_v4  ;;  %v1531_v58 = vld [vmem:[%s1872_s0 + $0x40] sm:$0xff] }
  0xf5   :  { %v1142_v5 = vsel %vm220_vm3, %v1133_v0, 0  ;;  %v1145_v14 = vsel %vm220_vm3, %v1134_v9, 0 }
  0xfa   :  { %v1127_v6 = vpop.permute.xlu0 %1126 }
  0xfb   :  { %v1129_v7 = vpop.permute.xlu1 %1128  ;;  %v1135_v10 = vsel %vm1132_vm10, %v1125_v4, %v1127_v6 }
  0xfc   :  { %v1136_v12 = vsel %vm1132_vm10, %v1127_v6, %v1129_v7  ;;  %v1137_v13 = vsel %vm1132_vm10, %v1129_v7, %v1131_v8  ;;  %v1148_v15 = vsel %vm220_vm3, %v1135_v10, 0 }
  0xfd   :  { %v1151_v16 = vsel %vm220_vm3, %v1136_v12, 0  ;;  %v1154_v17 = vsel %vm220_vm3, %v1137_v13, 0 }
  0xfe   :  { %1478 = vmatmul.msk.bf16.vlgmr.msra.gmra.mxu0 %vm216_vm4, %v1527_v43  ;;  %1485 = vmatmul.msk.bf16.vlgmr.msra.gmra.mxu1 %vm216_vm4, %v1528_v60 }
  0xff   :  { %1486 = vmatmul.msk.bf16.vlgmr.msra.gmra.mxu2 %vm216_vm4, %v1528_v60  ;;  %1052 = vmatpush.bf16.msra.mxu0 %v1009_v1 }
 0x100   :  { %1487 = vmatmul.msk.bf16.vlgmr.msra.gmra.mxu3 %vm216_vm4, %v1528_v60  ;;  %1066 = vmatpush.bf16.msra.mxu1 %v1012_v2 }
 0x101   :  { %1080 = vmatpush.bf16.msra.mxu2 %v1015_v3  ;;  %1163 = vmatpush.bf16.msra.mxu3 %v1142_v5 }
 0x102   :  { %v1260_v19 = vpop.permute.xlu0 %1259 }
 0x103   :  { %v1262_v18 = vpop.permute.xlu1 %1261 }
 0x104   :  { %v1273_v23 = vsel %vm1271_vm11, %v1262_v18, %v1264_v20  ;;  %v1272_v24 = vsel %vm1271_vm11, %v1260_v19, %v1262_v18 }
 0x105   :  { %v1284_v30 = vsel %vm220_vm3, %v1273_v23, 0  ;;  %v1281_v31 = vsel %vm220_vm3, %v1272_v24, 0 }
 0x10a   :  { %v1266_v21 = vpop.permute.xlu0 %1265 }
 0x10b   :  { %v1268_v22 = vpop.permute.xlu1 %1267  ;;  %v1274_v28 = vsel %vm1271_vm11, %v1264_v20, %v1266_v21 }
 0x10c   :  { %v1275_v29 = vsel %vm1271_vm11, %v1266_v21, %v1268_v22  ;;  %v1287_v32 = vsel %vm220_vm3, %v1274_v28, 0  ;;  %v1276_v45 = vsel %vm1271_vm11, %v1268_v22, %v1270_v38 }
 0x10d   :  { %v1290_v33 = vsel %vm220_vm3, %v1275_v29, 0  ;;  %v1293_v47 = vsel %vm220_vm3, %v1276_v45, 0 }
 0x10e   :  { %1488 = vmatmul.msk.bf16.vlgmr.msrb.gmra.mxu0 %vm216_vm4, %v1528_v60  ;;  %1489 = vmatmul.msk.bf16.vlgmr.msrb.gmra.mxu1 %vm216_vm4, %v1528_v60 }
 0x10f   :  { %1496 = vmatmul.msk.bf16.vlgmr.msrb.gmra.mxu2 %vm216_vm4, %v1529_v11  ;;  %1177 = vmatpush.bf16.msrb.mxu0 %v1145_v14 }
 0x110   :  { %1497 = vmatmul.msk.bf16.vlgmr.msrb.gmra.mxu3 %vm216_vm4, %v1529_v11  ;;  %1191 = vmatpush.bf16.msrb.mxu1 %v1148_v15 }
 0x111   :  { %1205 = vmatpush.bf16.msrb.mxu2 %v1151_v16  ;;  %1219 = vmatpush.bf16.msrb.mxu3 %v1154_v17 }
 0x11b   :  { %v245_v25 = vpop.f32.mrf.mxu0  ;;  %v259_v26 = vpop.f32.mrf.mxu1 }
 0x11e   :  { %1498 = vmatmul.msk.bf16.vlgmr.msra.gmra.mxu0 %vm216_vm4, %v1529_v11  ;;  %1499 = vmatmul.msk.bf16.vlgmr.msra.gmra.mxu1 %vm216_vm4, %v1529_v11 }
 0x11f   :  { %1500 = vmatmul.msk.bf16.vlgmr.msra.gmra.mxu2 %vm216_vm4, %v1529_v11  ;;  %1302 = vmatpush.bf16.msra.mxu0 %v1281_v31 }
 0x120   :  { %1507 = vmatmul.msk.bf16.vlgmr.msra.gmra.mxu3 %vm216_vm4, %v1530_v27  ;;  %1316 = vmatpush.bf16.msra.mxu1 %v1284_v30 }
 0x121   :  { %1330 = vmatpush.bf16.msra.mxu2 %v1287_v32  ;;  %1344 = vmatpush.bf16.msra.mxu3 %v1290_v33 }
 0x122   :  { %v273_v34 = vpop.f32.mrf.mxu2 }
 0x123   :  { %v287_v35 = vpop.f32.mrf.mxu3  ;;  %v247_v36 = vpop.f32.mrf.mxu0 }
 0x124   :  { %v261_v37 = vpop.f32.mrf.mxu1 }
 0x12a   :  { %v275_v40 = vpop.f32.mrf.mxu2 }
 0x12b   :  { %v289_v44 = vpop.f32.mrf.mxu3  ;;  %v301_v46 = vpop.f32.mrf.mxu0 }
 0x12c   :  { %v341_v39 = vpop.f32.mrf.mxu1 }
 0x12d   :  { %v342_v43 = vadd.f32 %v341_v39, %v245_v25 }
 0x12e   :  { %1508 = vmatmul.msk.bf16.vlgmr.msrb.gmra.mxu0 %vm216_vm4, %v1530_v27  ;;  %1509 = vmatmul.msk.bf16.vlgmr.msrb.gmra.mxu1 %vm216_vm4, %v1530_v27 }
 0x12f   :  { %1510 = vmatmul.msk.bf16.vlgmr.msrb.gmra.mxu2 %vm216_vm4, %v1530_v27  ;;  %1358 = vmatpush.bf16.msrb.mxu0 %v1293_v47 }
 0x130   :  { %1511 = vmatmul.msk.bf16.vlgmr.msrb.gmra.mxu3 %vm216_vm4, %v1530_v27 }
 0x132   :  { %v355_v48 = vpop.f32.mrf.mxu2 }
 0x133   :  { %v369_v49 = vpop.f32.mrf.mxu3  ;;  %v356_v50 = vadd.f32 %v355_v48, %v259_v26  ;;  %v303_v52 = vpop.f32.mrf.mxu0 }
 0x134   :  { %v370_v51 = vadd.f32 %v369_v49, %v273_v34  ;;  %v343_v53 = vpop.f32.mrf.mxu1 }
 0x135   :  { %v344_v55 = vadd.f32 %v343_v53, %v247_v36 }
 0x13a   :  { %v357_v56 = vpop.f32.mrf.mxu2 }
 0x13b   :  { %v371_v57 = vpop.f32.mrf.mxu3  ;;  %v358_v59 = vadd.f32 %v357_v56, %v261_v37  ;;  %v383_v61 = vpop.f32.mrf.mxu0 }
 0x13c   :  { %v372_v60 = vadd.f32 %v371_v57, %v275_v40  ;;  %v397_v62 = vpop.f32.mrf.mxu1  ;;  %v384_v63 = vadd.f32 %v383_v61, %v287_v35 }
 0x13d   :  { %v398_v0 = vadd.f32 %v397_v62, %v301_v46 }
 0x13e   :  { %1518 = vmatmul.msk.bf16.vlgmr.msra.gmra.mxu0 %vm216_vm4, %v1531_v58  ;;  %1519 = vmatmul.msk.bf16.vlgmr.msra.gmra.mxu1 %vm216_vm4, %v1531_v58 }
 0x13f   :  { %1520 = vmatmul.msk.bf16.vlgmr.msra.gmra.mxu2 %vm216_vm4, %v1531_v58 }
 0x140   :  { %1521 = vmatmul.msk.bf16.vlgmr.msra.gmra.mxu3 %vm216_vm4, %v1531_v58 }
 0x142   :  { %v470_v1 = vpop.f32.mrf.mxu2 }
 0x143   :  { %v484_v2 = vpop.f32.mrf.mxu3  ;;  %v531_v3 = vadd.f32 %v470_v1, %v342_v43  ;;  %v385_v5 = vpop.f32.mrf.mxu0 }
 0x144   :  { %v532_v4 = vadd.f32 %v484_v2, %v356_v50  ;;  %v399_v6 = vpop.f32.mrf.mxu1  ;;  %v386_v7 = vadd.f32 %v385_v5, %v289_v44 }
 0x145   :  { %v400_v8 = vadd.f32 %v399_v6, %v303_v52 }
 0x14a   :  { %v472_v9 = vpop.f32.mrf.mxu2 }
 0x14b   :  { %v486_v10 = vpop.f32.mrf.mxu3  ;;  %v536_v11 = vadd.f32 %v472_v9, %v344_v55  ;;  %v498_v13 = vpop.f32.mrf.mxu0 }
 0x14c   :  { %v537_v12 = vadd.f32 %v486_v10, %v358_v59  ;;  %v512_v14 = vpop.f32.mrf.mxu1  ;;  %v533_v15 = vadd.f32 %v498_v13, %v370_v51 }
 0x14d   :  { %v534_v16 = vadd.f32 %v512_v14, %v384_v63 }
 0x14e   :  { %1522 = vmatmul.msk.bf16.vlgmr.msrb.gmra.mxu0 %vm216_vm4, %v1531_v58 }
 0x152   :  { %v526_v17 = vpop.f32.mrf.mxu2 }
 0x153   :  { %v609_v18 = vpop.f32.mrf.mxu3  ;;  %v535_v19 = vadd.f32 %v526_v17, %v398_v0  ;;  %v500_v21 = vpop.f32.mrf.mxu0 }
 0x154   :  { %v670_v20 = vadd.f32 %v609_v18, %v531_v3  ;;  %v514_v22 = vpop.f32.mrf.mxu1  ;;  %v538_v23 = vadd.f32 %v500_v21, %v372_v60 }
 0x155   :  { %v539_v24 = vadd.f32 %v514_v22, %v386_v7 }
 0x15a   :  { %v528_v25 = vpop.f32.mrf.mxu2 }
 0x15b   :  { %v611_v26 = vpop.f32.mrf.mxu3  ;;  %v540_v27 = vadd.f32 %v528_v25, %v400_v8  ;;  %v623_v29 = vpop.f32.mrf.mxu0 }
 0x15c   :  { %v675_v28 = vadd.f32 %v611_v26, %v536_v11  ;;  %v637_v30 = vpop.f32.mrf.mxu1  ;;  %v671_v31 = vadd.f32 %v623_v29, %v532_v4 }
 0x15d   :  { %v672_v32 = vadd.f32 %v637_v30, %v533_v15 }
 0x162   :  { %v651_v33 = vpop.f32.mrf.mxu2 }
 0x163   :  { %v665_v34 = vpop.f32.mrf.mxu3  ;;  %v673_v35 = vadd.f32 %v651_v33, %v534_v16  ;;  %v625_v37 = vpop.f32.mrf.mxu0 }
 0x164   :  { %v674_v36 = vadd.f32 %v665_v34, %v535_v19  ;;  %v639_v38 = vpop.f32.mrf.mxu1  ;;  %v676_v40 = vadd.f32 %v625_v37, %v537_v12  ;;  %v1823_v33 = vpop.permute.xlu0 %1379 }
 0x165   :  { %v677_v44 = vadd.f32 %v639_v38, %v538_v23 }
 0x16a   :  { %v653_v45 = vpop.f32.mrf.mxu2 }
 0x16b   :  { %v667_v46 = vpop.f32.mrf.mxu3  ;;  %v678_v39 = vadd.f32 %v653_v45, %v539_v24  ;;  %v748_v42 = vpop.f32.mrf.mxu0 }
 0x16c   :  { %v679_v41 = vadd.f32 %v667_v46, %v540_v27  ;;  %v762_v43 = vpop.f32.mrf.mxu1  ;;  %v809_v47 = vadd.f32 %v748_v42, %v670_v20 }
 0x16d   :  { %v810_v48 = vadd.f32 %v762_v43, %v671_v31 }
 0x172   :  { %v776_v49 = vpop.f32.mrf.mxu2 }
 0x173   :  { %v790_v50 = vpop.f32.mrf.mxu3  ;;  %v811_v51 = vadd.f32 %v776_v49, %v672_v32  ;;  %v750_v53 = vpop.f32.mrf.mxu0 }
 0x174   :  { %v812_v52 = vadd.f32 %v790_v50, %v673_v35  ;;  %v764_v54 = vpop.f32.mrf.mxu1  ;;  %v814_v55 = vadd.f32 %v750_v53, %v675_v28 }
 0x175   :  { %v815_v56 = vadd.f32 %v764_v54, %v676_v40 }
 0x17a   :  { %v778_v57 = vpop.f32.mrf.mxu2 }
 0x17b   :  { %v792_v58 = vpop.f32.mrf.mxu3  ;;  %v1805_v59 = vadd.f32 %v778_v57, %v677_v44  ;;  %v804_v61 = vpop.f32.mrf.mxu0 }
 0x17c   :  { %v1807_v60 = vadd.f32 %v792_v58, %v678_v39  ;;  %v887_v62 = vpop.f32.mrf.mxu1  ;;  %v1809_v63 = vadd.f32 %v804_v61, %v674_v36 }
 0x17d   :  { %v948_v29 = vadd.f32 %v887_v62, %v809_v47  ;;  %v1385_v62 = vpop.permute.xlu1 %1384 }
 0x182   :  { %v901_v0 = vpop.f32.mrf.mxu2 }
 0x183   :  { %v915_v1 = vpop.f32.mrf.mxu3  ;;  %v806_v2 = vpop.f32.mrf.mxu0  ;;  %v949_v30 = vadd.f32 %v901_v0, %v810_v48 }
 0x184   :  { %v889_v3 = vpop.f32.mrf.mxu1  ;;  %v1811_v4 = vadd.f32 %v806_v2, %v679_v41  ;;  %v950_v46 = vadd.f32 %v915_v1, %v811_v51 }
 0x185   :  { %v953_v41 = vadd.f32 %v889_v3, %v814_v55 }
 0x18a   :  { %v903_v5 = vpop.f32.mrf.mxu2 }
 0x18b   :  { %v1813_v6 = vpop.f32.mrf.mxu3  ;;  %v929_v7 = vpop.f32.mrf.mxu0  ;;  %v954_v42 = vadd.f32 %v903_v5, %v815_v56 }
 0x18c   :  { %v1815_v8 = vpop.f32.mrf.mxu1  ;;  %v951_v39 = vadd.f32 %v929_v7, %v812_v52 }
 0x192   :  { %v1026_v9 = vpop.f32.mrf.mxu2 }
 0x193   :  { %v1040_v10 = vpop.f32.mrf.mxu3  ;;  %v931_v11 = vpop.f32.mrf.mxu0  ;;  %v1087_v31 = vadd.f32 %v1026_v9, %v948_v29  ;;  %v955_v9 = vadd.f32 %v1813_v6, %v1805_v59 }
 0x194   :  { %v1817_v12 = vpop.f32.mrf.mxu1  ;;  %v1088_v32 = vadd.f32 %v1040_v10, %v949_v30  ;;  %v956_v10 = vadd.f32 %v931_v11, %v1807_v60 }
 0x19a   :  { %v1028_v13 = vpop.f32.mrf.mxu2 }
 0x19b   :  { %v1042_v14 = vpop.f32.mrf.mxu3  ;;  %v1054_v15 = vpop.f32.mrf.mxu0  ;;  %v1092_v50 = vadd.f32 %v1028_v13, %v953_v41 }
 0x19c   :  { %v1068_v16 = vpop.f32.mrf.mxu1  ;;  %v1089_v48 = vadd.f32 %v1054_v15, %v950_v46  ;;  %v1093_v53 = vadd.f32 %v1042_v14, %v954_v42  ;;  %v952_v15 = vadd.f32 %v1815_v8, %v1809_v63 }
 0x19d   :  { %v1090_v49 = vadd.f32 %v1068_v16, %v951_v39 }
 0x1a2   :  { %v1819_v17 = vpop.f32.mrf.mxu2 }
 0x1a3   :  { %v1165_v18 = vpop.f32.mrf.mxu3  ;;  %v1056_v19 = vpop.f32.mrf.mxu0 }
 0x1a4   :  { %v1070_v20 = vpop.f32.mrf.mxu1  ;;  %v1226_v34 = vadd.f32 %v1165_v18, %v1087_v31  ;;  %v957_v31 = vadd.f32 %v1817_v12, %v1811_v4 }
 0x1aa   :  { %v1821_v21 = vpop.f32.mrf.mxu2 }
 0x1ab   :  { %v1167_v22 = vpop.f32.mrf.mxu3  ;;  %v1179_v23 = vpop.f32.mrf.mxu0 }
 0x1ac   :  { %v1193_v24 = vpop.f32.mrf.mxu1  ;;  %v1227_v35 = vadd.f32 %v1179_v23, %v1088_v32  ;;  %v1231_v0 = vadd.f32 %v1167_v22, %v1092_v50  ;;  %v1094_v22 = vadd.f32 %v1056_v19, %v955_v9  ;;  %v1095_v23 = vadd.f32 %v1070_v20, %v956_v10 }
 0x1ad   :  { %v1228_v58 = vadd.f32 %v1193_v24, %v1089_v48 }
 0x1b2   :  { %v1207_v25 = vpop.f32.mrf.mxu2 }
 0x1b3   :  { %v1221_v26 = vpop.f32.mrf.mxu3  ;;  %v1181_v27 = vpop.f32.mrf.mxu0  ;;  %v1229_v61 = vadd.f32 %v1207_v25, %v1090_v49 }
 0x1b4   :  { %v1195_v28 = vpop.f32.mrf.mxu1  ;;  %v1232_v2 = vadd.f32 %v1181_v27, %v1093_v53  ;;  %v1091_v27 = vadd.f32 %v1819_v17, %v952_v15 }
 0x1b5   :  { %v1233_v59 = vadd.f32 %v1195_v28, %v1094_v22 }
 0x1b6   :  { %v1230_v60 = vadd.f32 %v1221_v26, %v1091_v27 }
 0x1ba   :  { %v1209_v36 = vpop.f32.mrf.mxu2 }
 0x1bb   :  { %v1825_v37 = vpop.f32.mrf.mxu3  ;;  %v1304_v38 = vpop.f32.mrf.mxu0  ;;  %v1234_v6 = vadd.f32 %v1209_v36, %v1095_v23  ;;  %v1096_v36 = vadd.f32 %v1821_v21, %v957_v31 }
 0x1bc   :  { %v1318_v40 = vpop.f32.mrf.mxu1  ;;  %v1365_v44 = vadd.f32 %v1304_v38, %v1226_v34 }
 0x1bd   :  { %v1366_v45 = vadd.f32 %v1318_v40, %v1227_v35  ;;  %v1235_v40 = vadd.f32 %v1825_v37, %v1096_v36 }
 0x1be   :  { %v1387_v43 = vadd.f32 %v1823_v33, %v1365_v44 }
 0x1bf   :  { %v1388_v47 = vadd.f32 %v1823_v33, %v1366_v45 }
 0x1c0   :  { %v1397_v54 = vmax.f32 %v1387_v43, 0.0 }
 0x1c1   :  { %v1398_v57 = vmax.f32 %v1388_v47, 0.0 }
 0x1c2   :  { %1407 = vst [vmem:[%s1876_s4] sm:$0xff] %v1397_v54  ;;  %v1332_v51 = vpop.f32.mrf.mxu2 }
 0x1c3   :  { %v1346_v52 = vpop.f32.mrf.mxu3  ;;  %1408 = vst [vmem:[%s1876_s4 + $0x8] sm:$0xff] %v1398_v57  ;;  %v1367_v55 = vadd.f32 %v1332_v51, %v1228_v58  ;;  %v1306_v1 = vpop.f32.mrf.mxu0 }
 0x1c4   :  { %v1368_v56 = vadd.f32 %v1346_v52, %v1229_v61  ;;  %v1320_v3 = vpop.f32.mrf.mxu1  ;;  %v1370_v5 = vadd.f32 %v1306_v1, %v1231_v0 }
 0x1c5   :  { %v1371_v7 = vadd.f32 %v1320_v3, %v1232_v2  ;;  %v1389_v13 = vadd.f32 %v1823_v33, %v1367_v55 }
 0x1c6   :  { %v1390_v14 = vadd.f32 %v1823_v33, %v1368_v56  ;;  %v1392_v16 = vadd.f32 %v1385_v62, %v1370_v5 }
 0x1c7   :  { %v1393_v18 = vadd.f32 %v1385_v62, %v1371_v7  ;;  %v1399_v24 = vmax.f32 %v1389_v13, 0.0 }
 0x1c8   :  { %v1400_v25 = vmax.f32 %v1390_v14, 0.0  ;;  %v1402_v29 = vmax.f32 %v1392_v16, 0.0 }
 0x1c9   :  { %v1403_v30 = vmax.f32 %v1393_v18, 0.0  ;;  %1409 = vst [vmem:[%s1876_s4 + $0x10] sm:$0xff] %v1399_v24 }
 0x1ca   :  { %1410 = vst [vmem:[%s1876_s4 + $0x18] sm:$0xff] %v1400_v25  ;;  %v1334_v63 = vpop.f32.mrf.mxu2 }
 0x1cb   :  { %v1348_v8 = vpop.f32.mrf.mxu3  ;;  %1412 = vst [vmem:[%s1876_s4 + $0x28] sm:$0xff] %v1402_v29  ;;  %v1372_v11 = vadd.f32 %v1334_v63, %v1233_v59  ;;  %v1360_v19 = vpop.f32.mrf.mxu0 }
 0x1cc   :  { %v1373_v17 = vadd.f32 %v1348_v8, %v1234_v6  ;;  %1413 = vst [vmem:[%s1876_s4 + $0x30] sm:$0xff] %v1403_v30  ;;  %v1369_v20 = vadd.f32 %v1360_v19, %v1230_v60 }
 0x1cd   :  { %v1394_v28 = vadd.f32 %v1385_v62, %v1372_v11 }
 0x1ce   :  { %v1395_v26 = vadd.f32 %v1385_v62, %v1373_v17  ;;  %v1391_v32 = vadd.f32 %v1823_v33, %v1369_v20 }
 0x1cf   :  { %v1404_v34 = vmax.f32 %v1394_v28, 0.0 }
 0x1d0   :  { %v1405_v35 = vmax.f32 %v1395_v26, 0.0  ;;  %v1401_v38 = vmax.f32 %v1391_v32, 0.0 }
 0x1d1   :  { %1414 = vst [vmem:[%s1876_s4 + $0x38] sm:$0xff] %v1404_v34 }
 0x1d2   :  { %1415 = vst [vmem:[%s1876_s4 + $0x40] sm:$0xff] %v1405_v35 }
 0x1d3   :  { %1411 = vst [vmem:[%s1876_s4 + $0x20] sm:$0xff] %v1401_v38  ;;  %v1362_v4 = vpop.f32.mrf.mxu0 }
 0x1d4   :  { %v1374_v12 = vadd.f32 %v1362_v4, %v1235_v40 }
 0x1d6   :  { %v1396_v33 = vadd.f32 %v1385_v62, %v1374_v12 }
 0x1d8   :  { %v1406_v44 = vmax.f32 %v1396_v33, 0.0 }
 0x1da   :  { %1416 = vst [vmem:[%s1876_s4 + $0x48] sm:$0xff] %v1406_v44 }

</bundles_post_ra>
